<compile_context>
chip_gen: v6e
topology: v6e:2x2x1
jax: 0.10.0
libtpu: 0.0.40
codegen_flags: <defaults>
</compile_context>

<pallas_src>
import numpy as np
import jax
import jax.numpy as jnp
from jax.experimental import pallas as pl
from jax.experimental.pallas import tpu as pltpu


# ----------------------------------------------------------------------------
# Pallas kernel
# ----------------------------------------------------------------------------
def _tile_heads(t, n_heads):
    """Broadcast a (ts, D) table across heads along the lane axis -> (ts, H*D)."""
    if n_heads == 1:
        return t
    return jnp.concatenate([t] * n_heads, axis=-1)


def _rope_kernel(x_ref, cos_ref, sin_ref, o_ref):
    # x_ref/o_ref blocks: (1, ts, H*D); cos/sin blocks: (ts, D) single-head width.
    x = x_ref[0].astype(jnp.float32)                    # (ts, HD)
    hd = x.shape[-1]
    d = cos_ref.shape[-1]
    n_heads = hd // d

    cos = _tile_heads(cos_ref[...], n_heads)            # (ts, HD)  [c0,c0,c1,c1,...]
    sin = _tile_heads(sin_ref[...], n_heads)            # (ts, HD)  [-s0,+s0,-s1,+s1,...]

    # partner[d] = x[d ^ 1] (swap within each even/odd lane pair).
    # Built from two static lane shifts + a parity select; the wrap-around
    # lanes (d=0, d=HD-1) are never selected, so the wrap value is irrelevant.
    left = jnp.roll(x, -1, axis=-1)                     # left[d]  = x[d + 1]
    right = jnp.roll(x, 1, axis=-1)                     # right[d] = x[d - 1]
    lane = jax.lax.broadcasted_iota(jnp.int32, x.shape, 1)
    partner = jnp.where(lane % 2 == 0, left, right)

    #  even d=2i : x[2i]  *c_i - x[2i+1]*s_i
    #  odd  d=2i+1: x[2i+1]*c_i + x[2i]  *s_i
    o_ref[0] = (x * cos + partner * sin).astype(o_ref.dtype)


# ----------------------------------------------------------------------------
# Table construction (mirrors the module's rope_init / build_rope_cache)
# ----------------------------------------------------------------------------
def build_rope_tables(max_seq_len, head_dim, base=10000, dtype=jnp.float32):
    """Single-head-width tables of shape (max_seq_len, head_dim):
       cos_full[:, 2i] = cos_full[:, 2i+1] = cos(p * theta_i)
       sin_signed[:, 2i] = -sin(p * theta_i), sin_signed[:, 2i+1] = +sin(p * theta_i)
    """
    theta = 1.0 / (jnp.float32(base)
                   ** (jnp.arange(0, head_dim, 2, dtype=jnp.float32) / head_dim))
    pos = jnp.arange(max_seq_len, dtype=jnp.float32)
    ang = pos[:, None] * theta[None, :]                           # (S, D/2)
    cos = jnp.cos(ang)
    sin = jnp.sin(ang)
    cos_full = jnp.stack([cos, cos], axis=-1).reshape(max_seq_len, head_dim)
    sin_signed = jnp.stack([-sin, sin], axis=-1).reshape(max_seq_len, head_dim)
    return cos_full.astype(dtype), sin_signed.astype(dtype)


# ----------------------------------------------------------------------------
# Forward wrapper
# ----------------------------------------------------------------------------
def _pick_seq_tile(S, HD, itemsize, target_block_bytes=4 * 1024 * 1024,
                   max_rows=1024):
    """Byte-based tile sizing: ~target bytes per x block, multiple of 8 rows."""
    rows = target_block_bytes // max(1, HD * itemsize)
    rows = int(max(8, min(max_rows, rows)))
    rows = (rows // 8) * 8
    return S if S <= rows else rows


def rope_forward(x, cos_tab, sin_tab, *, seq_tile=None):
    """x: (B, S, H, D); cos_tab/sin_tab: (max_seq_len, D) f32 -> (B, S, H, D)."""
    B, S, H, D = x.shape
    HD = H * D
    max_seq_len, tab_d = cos_tab.shape
    assert tab_d == D, "table head_dim mismatch"
    assert S <= max_seq_len, "sequence length exceeds cached RoPE table"
    # TODO(synk): input_pos (explicit per-token positions) not supported.

    itemsize = x.dtype.itemsize
    ts = seq_tile if seq_tile is not None else _pick_seq_tile(S, HD, itemsize)
    ts = min(ts, S)
    num_s = pl.cdiv(S, ts)

    xf = x.reshape(B, S, HD)                       # lane-dense metadata-only view

    # Advisory cost: x read + out write + table rows read once per seq tile.
    bytes_accessed = (2 * B * S * HD * itemsize
                      + 2 * S * D * cos_tab.dtype.itemsize)
    cost = pl.CostEstimate(flops=4 * B * S * HD, transcendentals=0,
                           bytes_accessed=int(bytes_accessed))

    # VMEM budget: double-buffered x/out blocks + double-buffered (ts, D) table
    # blocks + f32 temporaries for the in-kernel broadcast/upcast/swap.
    blk_bytes = ts * HD * itemsize
    tab_bytes = ts * D * cos_tab.dtype.itemsize
    vmem_need = 4 * blk_bytes + 4 * tab_bytes + 6 * ts * HD * 4
    vmem_limit = int(min(128 * 1024 * 1024, max(32 * 1024 * 1024, 2 * vmem_need)))

    out = pl.pallas_call(
        _rope_kernel,
        out_shape=jax.ShapeDtypeStruct((B, S, HD), x.dtype),
        grid=(num_s, B),                           # batch innermost -> table reuse
        in_specs=[
            pl.BlockSpec((1, ts, HD), lambda s, b: (b, s, 0)),
            pl.BlockSpec((ts, D), lambda s, b: (s, 0)),   # full table, rows via index_map
            pl.BlockSpec((ts, D), lambda s, b: (s, 0)),
        ],
        out_specs=pl.BlockSpec((1, ts, HD), lambda s, b: (b, s, 0)),
        compiler_params=pltpu.CompilerParams(
            dimension_semantics=("parallel", "parallel"),
            vmem_limit_bytes=vmem_limit),
        cost_estimate=cost,
    )(xf, cos_tab, sin_tab)
    return out.reshape(B, S, H, D)


# ----------------------------------------------------------------------------
# Pure-JAX reference (mirrors the PyTorch module exactly, interleaved RoPE)
# ----------------------------------------------------------------------------
def rope_ref(x, base=10000):
    B, S, H, D = x.shape
    theta = 1.0 / (jnp.float32(base)
                   ** (jnp.arange(0, D, 2, dtype=jnp.float32) / D))
    ang = jnp.arange(S, dtype=jnp.float32)[:, None] * theta[None, :]   # (S, D/2)
    cos = jnp.cos(ang)[None, :, None, :]
    sin = jnp.sin(ang)[None, :, None, :]
    xs = x.astype(jnp.float32).reshape(B, S, H, D // 2, 2)
    x0, x1 = xs[..., 0], xs[..., 1]
    out = jnp.stack([x0 * cos - x1 * sin, x1 * cos + x0 * sin], axis=-1)
    return out.reshape(B, S, H, D).astype(x.dtype)


# ----------------------------------------------------------------------------
if __name__ == "__main__":
    # Small config consistent with the module: [b, s, n_h, h_d] = [2, 8, 4, 32]
    # (h_d * n_h = 128 -> one full vreg lane width), max_seq_len cache = 32.
    B, S, H, D = 2, 8, 4, 32
    MAX_SEQ = 32

    key = jax.random.PRNGKey(0)
    x = jax.random.normal(key, (B, S, H, D), dtype=jnp.float32)

    cos_tab, sin_tab = build_rope_tables(MAX_SEQ, D, base=10000)

    fwd = jax.jit(rope_forward)
    out = fwd(x, cos_tab, sin_tab)
    out = jax.block_until_ready(out)

    ref = rope_ref(x, base=10000)
    np.testing.assert_allclose(np.asarray(out), np.asarray(ref),
                               rtol=1e-5, atol=1e-5)
    print("KERNEL_OK")
</pallas_src>

<mosaic_0001>
module attributes {stable_mosaic.version = 11 : i64} {
  func.func @_rope_kernel(%arg0: i32, %arg1: i32, %arg2: memref<1x8x128xf32, #tpu.memory_space<vmem>>, %arg3: memref<8x32xf32, #tpu.memory_space<vmem>>, %arg4: memref<8x32xf32, #tpu.memory_space<vmem>>, %arg5: memref<1x8x128xf32, #tpu.memory_space<vmem>>) attributes {dimension_semantics = [#tpu.dimension_semantics<parallel>, #tpu.dimension_semantics<parallel>], iteration_bounds = array<i64: 1, 2>, scalar_prefetch = 0 : i64, scratch_operands = 0 : i64, tpu.core_type = #tpu.core_type<tc>, window_params = [{transform_indices = @transform_0, window_bounds = array<i64: 1, 8, 128>}, {transform_indices = @transform_1, window_bounds = array<i64: 8, 32>}, {transform_indices = @transform_2, window_bounds = array<i64: 8, 32>}, {transform_indices = @transform_3, window_bounds = array<i64: 1, 8, 128>}]} {
    %c0 = arith.constant 0 : index
    %c0_0 = arith.constant 0 : index
    %c0_1 = arith.constant 0 : index
    %0 = vector.load %arg2[%c0, %c0_0, %c0_1] : memref<1x8x128xf32, #tpu.memory_space<vmem>>, vector<1x8x128xf32>
    %1 = vector.shape_cast %0 : vector<1x8x128xf32> to vector<8x128xf32>
    %c0_2 = arith.constant 0 : index
    %c0_3 = arith.constant 0 : index
    %2 = vector.load %arg3[%c0_2, %c0_3] : memref<8x32xf32, #tpu.memory_space<vmem>>, vector<8x32xf32>
    %3 = tpu.concatenate %2, %2, %2, %2 in 1 : vector<8x32xf32>, vector<8x32xf32>, vector<8x32xf32>, vector<8x32xf32> -> vector<8x128xf32>
    %c0_4 = arith.constant 0 : index
    %c0_5 = arith.constant 0 : index
    %4 = vector.load %arg4[%c0_4, %c0_5] : memref<8x32xf32, #tpu.memory_space<vmem>>, vector<8x32xf32>
    %5 = tpu.concatenate %4, %4, %4, %4 in 1 : vector<8x32xf32>, vector<8x32xf32>, vector<8x32xf32>, vector<8x32xf32> -> vector<8x128xf32>
    %6 = vector.extract_strided_slice %1 {offsets = [0, 1], sizes = [8, 127], strides = [1, 1]} : vector<8x128xf32> to vector<8x127xf32>
    %7 = vector.extract_strided_slice %1 {offsets = [0, 0], sizes = [8, 1], strides = [1, 1]} : vector<8x128xf32> to vector<8x1xf32>
    %8 = tpu.concatenate %6, %7 in 1 : vector<8x127xf32>, vector<8x1xf32> -> vector<8x128xf32>
    %9 = vector.extract_strided_slice %1 {offsets = [0, 127], sizes = [8, 1], strides = [1, 1]} : vector<8x128xf32> to vector<8x1xf32>
    %10 = vector.extract_strided_slice %1 {offsets = [0, 0], sizes = [8, 127], strides = [1, 1]} : vector<8x128xf32> to vector<8x127xf32>
    %11 = tpu.concatenate %9, %10 in 1 : vector<8x1xf32>, vector<8x127xf32> -> vector<8x128xf32>
    %12 = tpu.iota {dimensions = array<i32: 1>} : vector<8x128xi32>
    %c2_i32 = arith.constant 2 : i32
    %c0_i32 = arith.constant 0 : i32
    %13 = arith.cmpi eq, %c2_i32, %c0_i32 : i32
    %c1_i32 = arith.constant 1 : i32
    %14 = arith.select %13, %c1_i32, %c2_i32 : i32
    %15 = vector.broadcast %14 : i32 to vector<8x128xi32>
    %16 = arith.remsi %12, %15 : vector<8x128xi32>
    %c0_i32_6 = arith.constant 0 : i32
    %17 = vector.broadcast %c0_i32_6 : i32 to vector<8x128xi32>
    %18 = arith.cmpi ne, %16, %17 : vector<8x128xi32>
    %c0_i32_7 = arith.constant 0 : i32
    %19 = vector.broadcast %c0_i32_7 : i32 to vector<8x128xi32>
    %20 = arith.cmpi slt, %16, %19 : vector<8x128xi32>
    %c0_i32_8 = arith.constant 0 : i32
    %21 = arith.cmpi slt, %14, %c0_i32_8 : i32
    %22 = vector.broadcast %21 : i1 to vector<8x128xi1>
    %23 = vector.broadcast %22 : vector<8x128xi1> to vector<8x128xi1>
    %24 = arith.xori %20, %23 : vector<8x128xi1>
    %25 = arith.andi %24, %18 : vector<8x128xi1>
    %26 = vector.broadcast %14 : i32 to vector<8x128xi32>
    %27 = arith.addi %16, %26 : vector<8x128xi32>
    %28 = arith.select %25, %27, %16 : vector<8x128xi1>, vector<8x128xi32>
    %c0_i32_9 = arith.constant 0 : i32
    %29 = vector.broadcast %c0_i32_9 : i32 to vector<8x128xi32>
    %30 = arith.cmpi eq, %28, %29 : vector<8x128xi32>
    %31 = arith.select %30, %8, %11 : vector<8x128xi1>, vector<8x128xf32>
    %32 = arith.mulf %1, %3 : vector<8x128xf32>
    %33 = arith.mulf %31, %5 : vector<8x128xf32>
    %34 = arith.addf %32, %33 : vector<8x128xf32>
    %c0_10 = arith.constant 0 : index
    %c0_11 = arith.constant 0 : index
    %c0_12 = arith.constant 0 : index
    %35 = vector.load %arg5[%c0_10, %c0_11, %c0_12] : memref<1x8x128xf32, #tpu.memory_space<vmem>>, vector<1x8x128xf32>
    %36 = vector.shape_cast %35 : vector<1x8x128xf32> to vector<8x128xf32>
    %37 = vector.shape_cast %34 : vector<8x128xf32> to vector<1x8x128xf32>
    tpu.vector_store %arg5[%c0_10, %c0_11, %c0_12], %37 {strides = array<i32>} : memref<1x8x128xf32, #tpu.memory_space<vmem>>, vector<1x8x128xf32>,
    return
  }
  func.func @transform_0(%arg0: i32, %arg1: i32) -> (i32, i32, i32) {
    %c0_i32 = arith.constant 0 : i32
    %c0_i32_0 = arith.constant 0 : i32
    return %arg1, %arg0, %c0_i32 : i32, i32, i32
  }
  func.func @transform_1(%arg0: i32, %arg1: i32) -> (i32, i32) {
    %c0_i32 = arith.constant 0 : i32
    %c0_i32_0 = arith.constant 0 : i32
    return %arg0, %c0_i32 : i32, i32
  }
  func.func @transform_2(%arg0: i32, %arg1: i32) -> (i32, i32) {
    %c0_i32 = arith.constant 0 : i32
    %c0_i32_0 = arith.constant 0 : i32
    return %arg0, %c0_i32 : i32, i32
  }
  func.func @transform_3(%arg0: i32, %arg1: i32) -> (i32, i32, i32) {
    %c0_i32 = arith.constant 0 : i32
    %c0_i32_0 = arith.constant 0 : i32
    return %arg1, %arg0, %c0_i32 : i32, i32, i32
  }
}

</mosaic_0001>

<bundles_post_ra>
// kernel: rope_forward.1
= control target key start
LH: loop header
LB: loop body
LE: loop exit
PB: predicated region body
PF: predicated region fallthrough
CT: control target
= control target key end

     0   :  { %s484_s12 = smov 0   ;;  %s486_s13 = smov 0   ;;  %s530_s0 = inlined_call_operand.vmem [shape: f32[2,8,128], index: 0, kind: input, shape index: {}]   ;;  %s531_s1 = inlined_call_operand.vmem [shape: f32[32,32], index: 1, kind: input, shape index: {}]   ;;  %s532_s2 = inlined_call_operand.vmem [shape: f32[32,32], index: 2, kind: input, shape index: {}]   ;;  %s533_s3 = inlined_call_operand.vmem [shape: f32[2,8,128], index: 3, kind: output, shape index: {}]  }
   0x1   :  { %s488_s14 = smov 0  }
   0x2 LB: > { %s22_s15 = sadd.s32 1, %s453_s13  ;;  %p401_p0 = scmp.ge.s32.totalorder %s457_s14, 1  ;;  %s457_s14 = sphi %s488_s14, %s13_s14   ;;  %s453_s13 = sphi %s486_s13, %s535_s13   ;;  %s449_s12 = sphi %s484_s12, %s534_s12  }
   0x3   : > { %p23_p1 = scmp.ge.s32.totalorder %s22_s15, 2  ;;  %p173_p2 = scmp.lt.s32.totalorder %s457_s14, 3 }
   0x5   : > { %s537_s15 = smov (%p23_p1, %s22_s15), 0  ;;  %p174_p3 = pnand %p401_p0, %p173_p2 }
   0x6   : > { %s459_s18 = smov (!%p174_p3), 64   ;;  %s460_s19 = smov (!%p174_p3), 32  }
   0x7   : > { %177 = sbr.rel (%p174_p3) target bundleno = 146 (0x92), region = 32  ;;  %p209_p4 = scmp.lt.s32.totalorder (!%p174_p3), %s449_s12, 1 }
   0x8   : > { %s461_s26 = smov (!%p174_p3), 96   ;;  %s462_s27 = smov (!%p174_p3), 1  }
   0x9   : > { %s463_s28 = smov (!%p174_p3), 127  }
   0xc   : > { %v232_v0 = vld [vmem:[%s531_s1] sm:$0xff]  ;;  %s539_s12 = smov (!%p209_p4, %s449_s12), 1  ;;  %v270_v3 = vlaneseq  ;;  %vm243_vm0 = vcmask 261120   ;;  %vm245_vm1 = vcmask 523264   ;;  %vm247_vm2 = vcmask 785408  }
   0xd   : > { %237 = vrot.lane.b32.xlu1 %v232_v0, %s459_s18  ;;  %234 = vrot.lane.b32.xlu0 %v232_v0, %s460_s19  ;;  %v249_v1 = vld [vmem:[%s532_s2] sm:$0xff]  ;;  %s402_s22 = sshll.u32 %s539_s12, 3 }
   0xe   : > { %s215_s25 = scalar_lea.vmem %s530_s0, %s402_s22  ;;  %v271_v6 = vand.u32 127, %v270_v3  ;;  %s230_s4 = scalar_lea.vmem %s533_s3, %s402_s22 }
   0xf   : > { %v231_v2 = vld [vmem:[%s215_s25] sm:$0xff] }
  0x10   : > { %v276_v9 = vand.u32 1, %v271_v6 }
  0x11   : > { %254 = vrot.lane.b32.xlu1 %v249_v1, %s459_s18  ;;  %251 = vrot.lane.b32.xlu0 %v249_v1, %s460_s19 }
  0x12   : > { %vm284_vm3 = vcmp.eq.s32.totalorder %v276_v9, 0 }
  0x15   : > { %257 = vrot.lane.b32.xlu1 %v249_v1, %s461_s26  ;;  %240 = vrot.lane.b32.xlu0 %v232_v0, %s461_s26 }
  0x19   : > { %267 = vrot.lane.b32.xlu1 %v231_v2, %s462_s27  ;;  %264 = vrot.lane.b32.xlu0 %v231_v2, %s463_s28 }
  0x7f   : > { %v238_v4 = vpop.permute.xlu1 %237  ;;  %v235_v5 = vpop.permute.xlu0 %234 }
  0x80   : > { %v244_v10 = vsel %vm243_vm0, %v232_v0, %v235_v5 }
  0x81   : > { %v246_v14 = vsel %vm245_vm1, %v244_v10, %v238_v4 }
  0x83   : > { %v255_v7 = vpop.permute.xlu1 %254  ;;  %v252_v8 = vpop.permute.xlu0 %251 }
  0x84   : > { %v260_v13 = vsel %vm243_vm0, %v249_v1, %v252_v8 }
  0x85   : > { %v261_v16 = vsel %vm245_vm1, %v260_v13, %v255_v7 }
  0x87   : > { %v258_v11 = vpop.permute.xlu1 %257  ;;  %v241_v12 = vpop.permute.xlu0 %240 }
  0x88   : > { %v248_v15 = vsel %vm247_vm2, %v246_v14, %v241_v12  ;;  %v262_v19 = vsel %vm247_vm2, %v261_v16, %v258_v11 }
  0x89   : > { %v286_v21 = vmul.f32 %v248_v15, %v231_v2 }
  0x8b   : > { %v268_v17 = vpop.permute.xlu1 %267  ;;  %v265_v18 = vpop.permute.xlu0 %264 }
  0x8c   : > { %v285_v20 = vsel %vm284_vm3, %v265_v18, %v268_v17 }
  0x8d   : > { %v287_v22 = vmul.f32 %v285_v20, %v262_v19 }
  0x8f   : > { %v288_v23 = vadd.f32 %v287_v22, %v286_v21 }
  0x91   : > { %289 = vst [vmem:[%s230_s4] sm:$0xff] %v288_v23 }
  0x92 PF: > { %s13_s14 = sadd.s32 1, %s457_s14   ;;  %s534_s12 = smov %s453_s13 }
  0x93   : > { %p10_p5 = scmp.ge.s32.totalorder %s13_s14, 4   ;;  %s535_s13 = smov %s537_s15 }
  0x95   :  { %12 = sbr.rel (!%p10_p5) target bundleno = 2 (0x2), region = 68 }

</bundles_post_ra>
